<compile_context>
chip_gen: v7x
topology: tpu7x:2x2x1
jax: 0.10.0
libtpu: 0.0.40
codegen_flags: <defaults>
</compile_context>

<pallas_src>
import functools

import jax
import jax.numpy as jnp
from jax.experimental import pallas as pl
from jax.experimental.pallas import tpu as pltpu


def _gconv_kernel(x_ref, adj_ref, w_ref, b_ref, o_ref, h_scr, acc_scr,
                  *, order, f_in, tile_n, resident_a):
    a = pl.program_id(0)          # adjacency index
    k = pl.program_id(1)          # hop / power index within this adjacency
    r = pl.program_id(2)          # row-tile index

    row0 = pl.multiple_of(r * tile_n, tile_n)

    # ---- per-adjacency setup -------------------------------------------------
    # Stage x (already bf16) into the "previous h" slot once per adjacency so the
    # propagation reads exactly one slot, with no full-array selects.
    @pl.when(jnp.logical_and(k == 0, r == 0))
    def _stage_x():
        h_scr[1, :, :] = x_ref[...]

    # Accumulator init for this row tile.  Adjacency 0 owns the bias and the
    # x @ W[0] term; other adjacencies' partials start at zero (summed in the
    # wrapper), which keeps the adjacency grid axis independent.
    @pl.when(jnp.logical_and(k == 0, a == 0))
    def _init_base():
        x_rows = x_ref[pl.ds(row0, tile_n), :]
        w0 = w_ref[pl.ds(0, f_in), :]
        acc_scr[pl.ds(row0, tile_n), :] = b_ref[...] + jnp.dot(
            x_rows, w0, preferred_element_type=jnp.float32)

    @pl.when(jnp.logical_and(k == 0, a != 0))
    def _init_zero():
        acc_scr[pl.ds(row0, tile_n), :] = jnp.zeros(
            (tile_n, acc_scr.shape[-1]), jnp.float32)

    # ---- one propagation hop:  h_k = (D^-1 A) h_{k-1}   (bf16 x bf16 -> f32) --
    # Adjacency is pre-normalized (exact f32 row sums) in the wrapper.
    if resident_a:
        a_tile = adj_ref[pl.ds(row0, tile_n), :]        # slice of resident (N, N)
    else:
        a_tile = adj_ref[...]                           # streamed (tile_n, N)

    read_slot = (k + 1) % 2                             # hop k-1 wrote (k-1)%2
    h_prev = h_scr[read_slot]                           # (N, f_in) bf16
    h_new = jnp.dot(a_tile, h_prev, preferred_element_type=jnp.float32)
    h_bf = h_new.astype(jnp.bfloat16)                   # reused: store + projection

    # Ping-pong store (skipped on the final hop: never read again).
    not_last = k + 1 < order

    @pl.when(jnp.logical_and(not_last, (k % 2) == 0))
    def _store0():
        h_scr[0, pl.ds(row0, tile_n), :] = h_bf

    @pl.when(jnp.logical_and(not_last, (k % 2) == 1))
    def _store1():
        h_scr[1, pl.ds(row0, tile_n), :] = h_bf

    # ---- accumulate this hop's projection:  acc += h_k @ W_chunk --------------
    wstart = pl.multiple_of((a * order + k + 1) * f_in, f_in)
    w_chunk = w_ref[pl.ds(wstart, f_in), :]             # (f_in, f_out_p) bf16
    acc_scr[pl.ds(row0, tile_n), :] += jnp.dot(
        h_bf, w_chunk, preferred_element_type=jnp.float32)

    # ---- last hop of this adjacency: flush this tile into the partial output --
    @pl.when(k == order - 1)
    def _flush():
        o_ref[pl.ds(row0, tile_n), :] = acc_scr[pl.ds(row0, tile_n), :].astype(
            o_ref.dtype)


def _round_up(x, m):
    return ((x + m - 1) // m) * m


def _vmem_bytes(N, tile_n, f_in, f_cat, f_out_p, resident_a):
    """Conservative VMEM estimate (Pallas double-buffers every pipelined block)."""
    bf16, f32 = 2, 4
    adj_block = (N * N if resident_a else tile_n * N) * bf16
    x_b = N * f_in * bf16
    w_b = f_cat * f_out_p * bf16
    b_b = f_out_p * f32
    out_b = N * f_out_p * f32
    scratch = 2 * N * f_in * bf16 + N * f_out_p * f32
    return 2 * (adj_block + x_b + w_b + b_b + out_b) + scratch


def gconv(x, adj_mats, w, b, *, num_adj, order, tile_n=None,
          vmem_budget_bytes=40 << 20):
    """Pallas GConv forward.

    x:        (N, F_in)
    adj_mats: (N, N, M)      -- PyTorch layout, adj_mats[:, :, i] = i-th adjacency
    w:        (F_out, F_cat) -- PyTorch nn.Linear weight
    b:        (F_out,)
    """
    N, f_in = x.shape
    f_out, f_cat = w.shape
    assert num_adj >= 1 and order >= 1
    assert f_cat == f_in * (num_adj * order + 1)
    assert adj_mats.shape == (N, N, num_adj)

    f_out_p = _round_up(f_out, 128)         # lane-dense output / W columns

    # ---- row-tile & residency selection against a v7x-safe VMEM budget --------
    if tile_n is None:
        if N <= 512:
            tile_n = N
        else:
            tile_n = next((t for t in (512, 256, 128) if N % t == 0), None)
            assert tile_n is not None, "pass tile_n: N not divisible by 128/256/512"
    assert N % tile_n == 0, "N must be a multiple of the row-tile size"

    resident_a = _vmem_bytes(N, tile_n, f_in, f_cat, f_out_p, True) <= vmem_budget_bytes
    if not resident_a:
        while (tile_n > 128 and N % (tile_n // 2) == 0 and
               _vmem_bytes(N, tile_n, f_in, f_cat, f_out_p, False) > vmem_budget_bytes):
            tile_n //= 2
    num_row_tiles = N // tile_n
    vmem_bytes = _vmem_bytes(N, tile_n, f_in, f_cat, f_out_p, resident_a)
    vmem_limit = max(vmem_bytes + (8 << 20), 32 << 20)

    # ---- host-side prep --------------------------------------------------------
    # TODO(synk): normalize_adj_mats is undefined in the provided source; exact
    # f32 row-normalization A_ij / sum_j A_ij (with 0-row guard) is assumed.
    # TODO(synk): for a static graph, hoist this normalize/transpose/cast out of
    # the per-call path; consider int8 (v5e/v6e) or fp8-e4m3 (v7x) adjacency to
    # further cut HBM bytes, and pl.Buffered(1) on the resident adjacency block.
    adj = jnp.transpose(adj_mats, (2, 0, 1)).astype(jnp.float32)        # (M, N, N)
    rowsum = jnp.sum(adj, axis=-1, keepdims=True)
    adj = (adj / jnp.where(rowsum == 0.0, 1.0, rowsum)).astype(jnp.bfloat16)

    x_bf = x.astype(jnp.bfloat16)
    w_t = jnp.zeros((f_cat, f_out_p), jnp.bfloat16).at[:, :f_out].set(
        jnp.transpose(w, (1, 0)).astype(jnp.bfloat16))
    b_p = jnp.zeros((1, f_out_p), jnp.float32).at[:, :f_out].set(
        b.reshape(1, f_out).astype(jnp.float32))

    kernel = functools.partial(_gconv_kernel, order=order, f_in=f_in,
                               tile_n=tile_n, resident_a=resident_a)

    if resident_a:
        # Block index changes only with the adjacency -> one DMA per adjacency.
        adj_spec = pl.BlockSpec((None, N, N), lambda a, k, r: (a, 0, 0))
        adj_stream_bytes = num_adj * N * N * 2
    else:
        adj_spec = pl.BlockSpec((None, tile_n, N), lambda a, k, r: (a, r, 0))
        adj_stream_bytes = num_adj * order * N * N * 2

    cost = pl.CostEstimate(
        flops=(2 * num_adj * order * N * N * f_in
               + 2 * num_adj * order * N * f_in * f_out_p
               + 2 * N * f_in * f_out_p),
        transcendentals=0,
        bytes_accessed=(adj_stream_bytes + N * f_in * 2 + f_cat * f_out_p * 2
                        + num_adj * N * f_out_p * 4 + f_out_p * 4),
    )

    partials = pl.pallas_call(
        kernel,
        out_shape=jax.ShapeDtypeStruct((num_adj, N, f_out_p), jnp.float32),
        grid_spec=pltpu.PrefetchScalarGridSpec(
            num_scalar_prefetch=0,
            grid=(num_adj, order, num_row_tiles),
            in_specs=[
                pl.BlockSpec((N, f_in), lambda a, k, r: (0, 0)),         # x (bf16)
                adj_spec,                                                # A (bf16, normalized)
                pl.BlockSpec((f_cat, f_out_p), lambda a, k, r: (0, 0)),  # W^T (bf16, padded)
                pl.BlockSpec((1, f_out_p), lambda a, k, r: (0, 0)),      # bias (f32, padded)
            ],
            out_specs=pl.BlockSpec((None, N, f_out_p), lambda a, k, r: (a, 0, 0)),
            scratch_shapes=[
                pltpu.VMEM((2, N, f_in), jnp.bfloat16),   # h ping-pong (bf16)
                pltpu.VMEM((N, f_out_p), jnp.float32),    # f32 accumulator
            ],
        ),
        compiler_params=pltpu.CompilerParams(
            # Adjacency partials are independent -> megacore-shardable on v7x;
            # hop and row-tile axes carry h / acc state -> "arbitrary".
            dimension_semantics=("parallel", "arbitrary", "arbitrary"),
            vmem_limit_bytes=int(vmem_limit),
        ),
        cost_estimate=cost,
    )(x_bf, adj, w_t, b_p)

    # Cheap XLA reduction over adjacencies + strip the lane padding.
    return jnp.sum(partials, axis=0)[:, :f_out].astype(x.dtype)


def gconv_reference(x, adj_mats, w, b, *, num_adj, order):
    """Pure-JAX (f32) mirror of the PyTorch forward, for correctness checking."""
    outs = [x]
    for i in range(num_adj):
        a = adj_mats[:, :, i]
        rowsum = jnp.sum(a, axis=-1, keepdims=True)
        a = a / jnp.where(rowsum == 0.0, 1.0, rowsum)
        h = x
        for _ in range(order):
            h = a @ h
            outs.append(h)
    h_cat = jnp.concatenate(outs, axis=-1)
    return h_cat @ w.T + b


if __name__ == "__main__":
    # Small deterministic configuration.
    N = 16             # number of graph nodes
    IN_HIDDEN = 32
    OUT_HIDDEN = 32
    NUM_ADJ = 2
    ORDER = 2
    F_CAT = IN_HIDDEN * (NUM_ADJ * ORDER + 1)   # 160

    key = jax.random.PRNGKey(0)
    kx, ka, kw, kb = jax.random.split(key, 4)

    x = jax.random.normal(kx, (N, IN_HIDDEN), dtype=jnp.float32)
    # non-negative adjacency weights (PyTorch layout (N, N, M))
    adj_mats = jax.random.uniform(ka, (N, N, NUM_ADJ), dtype=jnp.float32)

    # Deterministic nn.Linear-style init: U(-1/sqrt(fan_in), 1/sqrt(fan_in))
    bound = 1.0 / jnp.sqrt(jnp.float32(F_CAT))
    w = jax.random.uniform(kw, (OUT_HIDDEN, F_CAT), dtype=jnp.float32,
                           minval=-bound, maxval=bound)
    b = jax.random.uniform(kb, (OUT_HIDDEN,), dtype=jnp.float32,
                           minval=-bound, maxval=bound)

    out = gconv(x, adj_mats, w, b, num_adj=NUM_ADJ, order=ORDER)
    out = jax.block_until_ready(out)

    ref = gconv_reference(x, adj_mats, w, b, num_adj=NUM_ADJ, order=ORDER)
    assert out.shape == (N, OUT_HIDDEN)
    # bf16 adjacency / x / W operands (intentional; f32 accumulation, exact f32
    # row normalization) -> slightly looser tolerance than pure f32.
    assert jnp.allclose(out, ref, atol=2e-2, rtol=2e-2), "mismatch vs reference"

    print("KERNEL_OK")
</pallas_src>

<mosaic_0001>
module attributes {stable_mosaic.version = 11 : i64} {
  func.func @_gconv_kernel(%arg0: i32, %arg1: i32, %arg2: i32, %arg3: memref<16x32xbf16, #tpu.memory_space<vmem>>, %arg4: memref<1x16x16xbf16, #tpu.memory_space<vmem>>, %arg5: memref<160x128xbf16, #tpu.memory_space<vmem>>, %arg6: memref<1x128xf32, #tpu.memory_space<vmem>>, %arg7: memref<1x16x128xf32, #tpu.memory_space<vmem>>, %arg8: memref<2x16x32xbf16, #tpu.memory_space<vmem>>, %arg9: memref<16x128xf32, #tpu.memory_space<vmem>>) attributes {dimension_semantics = [#tpu.dimension_semantics<parallel>, #tpu.dimension_semantics<arbitrary>, #tpu.dimension_semantics<arbitrary>], iteration_bounds = array<i64: 2, 2, 1>, scalar_prefetch = 0 : i64, scratch_operands = 2 : i64, tpu.core_type = #tpu.core_type<tc>, window_params = [{pipeline_mode = #tpu.pipeline_mode<synchronous>, transform_indices = @transform_0, window_bounds = array<i64: 16, 32>}, {transform_indices = @transform_1, window_bounds = array<i64: 1, 16, 16>}, {pipeline_mode = #tpu.pipeline_mode<synchronous>, transform_indices = @transform_2, window_bounds = array<i64: 160, 128>}, {pipeline_mode = #tpu.pipeline_mode<synchronous>, transform_indices = @transform_3, window_bounds = array<i64: 1, 128>}, {transform_indices = @transform_4, window_bounds = array<i64: 1, 16, 128>}]} {
    %c16_i32 = arith.constant 16 : i32
    %0 = arith.muli %arg2, %c16_i32 : i32
    %1 = tpu.assume_multiple %0, 16 : i32
    %c0_i32 = arith.constant 0 : i32
    %2 = arith.cmpi eq, %arg1, %c0_i32 : i32
    %c0_i32_0 = arith.constant 0 : i32
    %3 = arith.cmpi eq, %arg2, %c0_i32_0 : i32
    %4 = arith.andi %2, %3 : i1
    %5 = arith.extui %4 : i1 to i32
    %c0_i32_1 = arith.constant 0 : i32
    %6 = arith.cmpi ne, %5, %c0_i32_1 : i32
    scf.if %6 {
      %c0_42 = arith.constant 0 : index
      %c0_43 = arith.constant 0 : index
      %82 = vector.load %arg3[%c0_42, %c0_43] : memref<16x32xbf16, #tpu.memory_space<vmem>>, vector<16x32xbf16>
      %c1 = arith.constant 1 : index
      %c0_44 = arith.constant 0 : index
      %c0_45 = arith.constant 0 : index
      %83 = vector.load %arg8[%c1, %c0_44, %c0_45] : memref<2x16x32xbf16, #tpu.memory_space<vmem>>, vector<1x16x32xbf16>
      %84 = vector.shape_cast %83 : vector<1x16x32xbf16> to vector<16x32xbf16>
      %85 = vector.shape_cast %82 : vector<16x32xbf16> to vector<1x16x32xbf16>
      tpu.vector_store %arg8[%c1, %c0_44, %c0_45], %85 {strides = array<i32>} : memref<2x16x32xbf16, #tpu.memory_space<vmem>>, vector<1x16x32xbf16>,
    } else {
    }
    %c0_i32_2 = arith.constant 0 : i32
    %7 = arith.cmpi eq, %arg1, %c0_i32_2 : i32
    %c0_i32_3 = arith.constant 0 : i32
    %8 = arith.cmpi eq, %arg0, %c0_i32_3 : i32
    %9 = arith.andi %7, %8 : i1
    %10 = arith.extui %9 : i1 to i32
    %c0_i32_4 = arith.constant 0 : i32
    %11 = arith.cmpi ne, %10, %c0_i32_4 : i32
    scf.if %11 {
      %82 = arith.index_cast %1 : i32 to index
      %c0_42 = arith.constant 0 : index
      %83 = vector.load %arg3[%82, %c0_42] : memref<16x32xbf16, #tpu.memory_space<vmem>>, vector<16x32xbf16>
      %c0_43 = arith.constant 0 : index
      %c0_44 = arith.constant 0 : index
      %84 = vector.load %arg5[%c0_43, %c0_44] : memref<160x128xbf16, #tpu.memory_space<vmem>>, vector<32x128xbf16>
      %c0_45 = arith.constant 0 : index
      %c0_46 = arith.constant 0 : index
      %85 = vector.load %arg6[%c0_45, %c0_46] : memref<1x128xf32, #tpu.memory_space<vmem>>, vector<1x128xf32>
      %cst_47 = arith.constant dense<0.000000e+00> : vector<16x128xf32>
      %86 = tpu.matmul %83, %84, %cst_47 {dimension_numbers = #tpu.dot_dimension_numbers<[1], [0], [0], [1], [0, 0, 1, 1], [], []>} : vector<16x32xbf16>, vector<32x128xbf16>, vector<16x128xf32> -> vector<16x128xf32>
      %87 = vector.broadcast %85 : vector<1x128xf32> to vector<16x128xf32>
      %88 = arith.addf %87, %86 : vector<16x128xf32>
      %89 = arith.index_cast %1 : i32 to index
      %c0_48 = arith.constant 0 : index
      %90 = vector.load %arg9[%89, %c0_48] : memref<16x128xf32, #tpu.memory_space<vmem>>, vector<16x128xf32>
      tpu.vector_store %arg9[%89, %c0_48], %88 {strides = array<i32>} : memref<16x128xf32, #tpu.memory_space<vmem>>, vector<16x128xf32>,
    } else {
    }
    %c0_i32_5 = arith.constant 0 : i32
    %12 = arith.cmpi eq, %arg1, %c0_i32_5 : i32
    %c0_i32_6 = arith.constant 0 : i32
    %13 = arith.cmpi ne, %arg0, %c0_i32_6 : i32
    %14 = arith.andi %12, %13 : i1
    %15 = arith.extui %14 : i1 to i32
    %c0_i32_7 = arith.constant 0 : i32
    %16 = arith.cmpi ne, %15, %c0_i32_7 : i32
    scf.if %16 {
      %cst_42 = arith.constant 0.000000e+00 : f32
      %82 = vector.broadcast %cst_42 : f32 to vector<16x128xf32>
      %83 = arith.index_cast %1 : i32 to index
      %c0_43 = arith.constant 0 : index
      %84 = vector.load %arg9[%83, %c0_43] : memref<16x128xf32, #tpu.memory_space<vmem>>, vector<16x128xf32>
      tpu.vector_store %arg9[%83, %c0_43], %82 {strides = array<i32>} : memref<16x128xf32, #tpu.memory_space<vmem>>, vector<16x128xf32>,
    } else {
    }
    %c0 = arith.constant 0 : index
    %17 = arith.index_cast %1 : i32 to index
    %c0_8 = arith.constant 0 : index
    %18 = vector.load %arg4[%c0, %17, %c0_8] : memref<1x16x16xbf16, #tpu.memory_space<vmem>>, vector<1x16x16xbf16>
    %19 = vector.shape_cast %18 : vector<1x16x16xbf16> to vector<16x16xbf16>
    %c1_i32 = arith.constant 1 : i32
    %20 = arith.addi %arg1, %c1_i32 : i32
    %c2_i32 = arith.constant 2 : i32
    %c0_i32_9 = arith.constant 0 : i32
    %21 = arith.cmpi eq, %c2_i32, %c0_i32_9 : i32
    %c1_i32_10 = arith.constant 1 : i32
    %22 = arith.select %21, %c1_i32_10, %c2_i32 : i32
    %23 = arith.remsi %20, %22 : i32
    %c0_i32_11 = arith.constant 0 : i32
    %24 = arith.cmpi ne, %23, %c0_i32_11 : i32
    %c0_i32_12 = arith.constant 0 : i32
    %25 = arith.cmpi slt, %23, %c0_i32_12 : i32
    %c0_i32_13 = arith.constant 0 : i32
    %26 = arith.cmpi slt, %22, %c0_i32_13 : i32
    %27 = arith.xori %25, %26 : i1
    %28 = arith.andi %27, %24 : i1
    %29 = arith.addi %23, %22 : i32
    %30 = arith.select %28, %29, %23 : i32
    %31 = arith.index_cast %30 : i32 to index
    %c0_14 = arith.constant 0 : index
    %c0_15 = arith.constant 0 : index
    %32 = vector.load %arg8[%31, %c0_14, %c0_15] : memref<2x16x32xbf16, #tpu.memory_space<vmem>>, vector<1x16x32xbf16>
    %33 = vector.shape_cast %32 : vector<1x16x32xbf16> to vector<16x32xbf16>
    %cst = arith.constant dense<0.000000e+00> : vector<16x32xf32>
    %34 = tpu.matmul %19, %33, %cst {dimension_numbers = #tpu.dot_dimension_numbers<[1], [0], [0], [1], [0, 0, 1, 1], [], []>} : vector<16x16xbf16>, vector<16x32xbf16>, vector<16x32xf32> -> vector<16x32xf32>
    %35 = arith.truncf %34 : vector<16x32xf32> to vector<16x32xbf16>
    %c1_i32_16 = arith.constant 1 : i32
    %36 = arith.addi %arg1, %c1_i32_16 : i32
    %c2_i32_17 = arith.constant 2 : i32
    %37 = arith.cmpi slt, %36, %c2_i32_17 : i32
    %c2_i32_18 = arith.constant 2 : i32
    %c0_i32_19 = arith.constant 0 : i32
    %38 = arith.cmpi eq, %c2_i32_18, %c0_i32_19 : i32
    %c1_i32_20 = arith.constant 1 : i32
    %39 = arith.select %38, %c1_i32_20, %c2_i32_18 : i32
    %40 = arith.remsi %arg1, %39 : i32
    %c0_i32_21 = arith.constant 0 : i32
    %41 = arith.cmpi ne, %40, %c0_i32_21 : i32
    %c0_i32_22 = arith.constant 0 : i32
    %42 = arith.cmpi slt, %40, %c0_i32_22 : i32
    %c0_i32_23 = arith.constant 0 : i32
    %43 = arith.cmpi slt, %39, %c0_i32_23 : i32
    %44 = arith.xori %42, %43 : i1
    %45 = arith.andi %44, %41 : i1
    %46 = arith.addi %40, %39 : i32
    %47 = arith.select %45, %46, %40 : i32
    %c0_i32_24 = arith.constant 0 : i32
    %48 = arith.cmpi eq, %47, %c0_i32_24 : i32
    %49 = arith.andi %37, %48 : i1
    %50 = arith.extui %49 : i1 to i32
    %c0_i32_25 = arith.constant 0 : i32
    %51 = arith.cmpi ne, %50, %c0_i32_25 : i32
    scf.if %51 {
      %c0_42 = arith.constant 0 : index
      %82 = arith.index_cast %1 : i32 to index
      %c0_43 = arith.constant 0 : index
      %83 = vector.load %arg8[%c0_42, %82, %c0_43] : memref<2x16x32xbf16, #tpu.memory_space<vmem>>, vector<1x16x32xbf16>
      %84 = vector.shape_cast %83 : vector<1x16x32xbf16> to vector<16x32xbf16>
      %85 = vector.shape_cast %35 : vector<16x32xbf16> to vector<1x16x32xbf16>
      tpu.vector_store %arg8[%c0_42, %82, %c0_43], %85 {strides = array<i32>} : memref<2x16x32xbf16, #tpu.memory_space<vmem>>, vector<1x16x32xbf16>,
    } else {
    }
    %c2_i32_26 = arith.constant 2 : i32
    %c0_i32_27 = arith.constant 0 : i32
    %52 = arith.cmpi eq, %c2_i32_26, %c0_i32_27 : i32
    %c1_i32_28 = arith.constant 1 : i32
    %53 = arith.select %52, %c1_i32_28, %c2_i32_26 : i32
    %54 = arith.remsi %arg1, %53 : i32
    %c0_i32_29 = arith.constant 0 : i32
    %55 = arith.cmpi ne, %54, %c0_i32_29 : i32
    %c0_i32_30 = arith.constant 0 : i32
    %56 = arith.cmpi slt, %54, %c0_i32_30 : i32
    %c0_i32_31 = arith.constant 0 : i32
    %57 = arith.cmpi slt, %53, %c0_i32_31 : i32
    %58 = arith.xori %56, %57 : i1
    %59 = arith.andi %58, %55 : i1
    %60 = arith.addi %54, %53 : i32
    %61 = arith.select %59, %60, %54 : i32
    %c1_i32_32 = arith.constant 1 : i32
    %62 = arith.cmpi eq, %61, %c1_i32_32 : i32
    %63 = arith.andi %37, %62 : i1
    %64 = arith.extui %63 : i1 to i32
    %c0_i32_33 = arith.constant 0 : i32
    %65 = arith.cmpi ne, %64, %c0_i32_33 : i32
    scf.if %65 {
      %c1 = arith.constant 1 : index
      %82 = arith.index_cast %1 : i32 to index
      %c0_42 = arith.constant 0 : index
      %83 = vector.load %arg8[%c1, %82, %c0_42] : memref<2x16x32xbf16, #tpu.memory_space<vmem>>, vector<1x16x32xbf16>
      %84 = vector.shape_cast %83 : vector<1x16x32xbf16> to vector<16x32xbf16>
      %85 = vector.shape_cast %35 : vector<16x32xbf16> to vector<1x16x32xbf16>
      tpu.vector_store %arg8[%c1, %82, %c0_42], %85 {strides = array<i32>} : memref<2x16x32xbf16, #tpu.memory_space<vmem>>, vector<1x16x32xbf16>,
    } else {
    }
    %c2_i32_34 = arith.constant 2 : i32
    %66 = arith.muli %arg0, %c2_i32_34 : i32
    %67 = arith.addi %66, %arg1 : i32
    %c1_i32_35 = arith.constant 1 : i32
    %68 = arith.addi %67, %c1_i32_35 : i32
    %c32_i32 = arith.constant 32 : i32
    %69 = arith.muli %68, %c32_i32 : i32
    %70 = tpu.assume_multiple %69, 32 : i32
    %71 = arith.index_cast %70 : i32 to index
    %c0_36 = arith.constant 0 : index
    %72 = vector.load %arg5[%71, %c0_36] : memref<160x128xbf16, #tpu.memory_space<vmem>>, vector<32x128xbf16>
    %73 = arith.index_cast %1 : i32 to index
    %c0_37 = arith.constant 0 : index
    %74 = vector.load %arg9[%73, %c0_37] : memref<16x128xf32, #tpu.memory_space<vmem>>, vector<16x128xf32>
    %cst_38 = arith.constant dense<0.000000e+00> : vector<16x128xf32>
    %75 = tpu.matmul %35, %72, %cst_38 {dimension_numbers = #tpu.dot_dimension_numbers<[1], [0], [0], [1], [0, 0, 1, 1], [], []>} : vector<16x32xbf16>, vector<32x128xbf16>, vector<16x128xf32> -> vector<16x128xf32>
    %76 = arith.addf %74, %75 : vector<16x128xf32>
    %77 = arith.index_cast %1 : i32 to index
    %c0_39 = arith.constant 0 : index
    %78 = vector.load %arg9[%77, %c0_39] : memref<16x128xf32, #tpu.memory_space<vmem>>, vector<16x128xf32>
    tpu.vector_store %arg9[%77, %c0_39], %76 {strides = array<i32>} : memref<16x128xf32, #tpu.memory_space<vmem>>, vector<16x128xf32>,
    %c1_i32_40 = arith.constant 1 : i32
    %79 = arith.cmpi eq, %arg1, %c1_i32_40 : i32
    %80 = arith.extui %79 : i1 to i32
    %c0_i32_41 = arith.constant 0 : i32
    %81 = arith.cmpi ne, %80, %c0_i32_41 : i32
    scf.if %81 {
      %82 = arith.index_cast %1 : i32 to index
      %c0_42 = arith.constant 0 : index
      %83 = vector.load %arg9[%82, %c0_42] : memref<16x128xf32, #tpu.memory_space<vmem>>, vector<16x128xf32>
      %c0_43 = arith.constant 0 : index
      %84 = arith.index_cast %1 : i32 to index
      %c0_44 = arith.constant 0 : index
      %85 = vector.load %arg7[%c0_43, %84, %c0_44] : memref<1x16x128xf32, #tpu.memory_space<vmem>>, vector<1x16x128xf32>
      %86 = vector.shape_cast %85 : vector<1x16x128xf32> to vector<16x128xf32>
      %87 = vector.shape_cast %83 : vector<16x128xf32> to vector<1x16x128xf32>
      tpu.vector_store %arg7[%c0_43, %84, %c0_44], %87 {strides = array<i32>} : memref<1x16x128xf32, #tpu.memory_space<vmem>>, vector<1x16x128xf32>,
    } else {
    }
    return
  }
  func.func @transform_0(%arg0: i32, %arg1: i32, %arg2: i32) -> (i32, i32) {
    %c0_i32 = arith.constant 0 : i32
    %c0_i32_0 = arith.constant 0 : i32
    %c0_i32_1 = arith.constant 0 : i32
    return %c0_i32, %c0_i32_0 : i32, i32
  }
  func.func @transform_1(%arg0: i32, %arg1: i32, %arg2: i32) -> (i32, i32, i32) {
    %c0_i32 = arith.constant 0 : i32
    %c0_i32_0 = arith.constant 0 : i32
    %c0_i32_1 = arith.constant 0 : i32
    return %arg0, %c0_i32, %c0_i32_0 : i32, i32, i32
  }
  func.func @transform_2(%arg0: i32, %arg1: i32, %arg2: i32) -> (i32, i32) {
    %c0_i32 = arith.constant 0 : i32
    %c0_i32_0 = arith.constant 0 : i32
    %c0_i32_1 = arith.constant 0 : i32
    return %c0_i32, %c0_i32_0 : i32, i32
  }
  func.func @transform_3(%arg0: i32, %arg1: i32, %arg2: i32) -> (i32, i32) {
    %c0_i32 = arith.constant 0 : i32
    %c0_i32_0 = arith.constant 0 : i32
    %c0_i32_1 = arith.constant 0 : i32
    return %c0_i32, %c0_i32_0 : i32, i32
  }
  func.func @transform_4(%arg0: i32, %arg1: i32, %arg2: i32) -> (i32, i32, i32) {
    %c0_i32 = arith.constant 0 : i32
    %c0_i32_0 = arith.constant 0 : i32
    %c0_i32_1 = arith.constant 0 : i32
    return %arg0, %c0_i32, %c0_i32_0 : i32, i32, i32
  }
}

</mosaic_0001>

<bundles_post_ra>
// kernel: tpu_custom_call.1
= control target key start
LH: loop header
LB: loop body
LE: loop exit
PB: predicated region body
PF: predicated region fallthrough
CT: control target
= control target key end

     0   :  { %s1461_s0 = inlined_call_operand.hbm [shape: bf16[16,32], index: 0, kind: input, shape index: {}]   ;;  %s1462_s1 = inlined_call_operand.hbm [shape: bf16[2,16,16], index: 1, kind: input, shape index: {}]   ;;  %s1463_s2 = inlined_call_operand.hbm [shape: bf16[160,128], index: 2, kind: input, shape index: {}]   ;;  %s1464_s3 = inlined_call_operand.vmem [shape: f32[1,128], index: 3, kind: input, shape index: {}]   ;;  %s1465_s4 = inlined_call_operand.hbm [shape: f32[2,16,128], index: 4, kind: output, shape index: {}]  }
   0x1   :  { %1475 = sst [smem:[#allocation17_spill]] %s1465_s4 }
   0x2   :  { %9 = vsyncpa [#allocation5], 0 }
   0x3   :  { %10 = vsyncpa [#allocation8], 0 }
   0x4   :  { %12 = vsyncpa [#allocation8 + $0x1], 0 }
   0x5   :  { %13 = vsyncpa [#allocation6], 0 }
   0x6   :  { %15 = vsyncpa [#allocation6 + $0x1], 0  ;;  %s1142_s15 = smov 0   ;;  %s1144_s16 = smov 0  }
   0x7   :  { %s1146_s17 = smov 0   ;;  %s1148_s18 = smov 0  }
   0x8   :  { %s1150_s19 = smov 0   ;;  %s1152_s20 = smov 0  }
   0x9   :  { %s1154_s21 = smov 0   ;;  %s1156_s22 = smov 0  }
   0xa LB: > { %1476 = sst [smem:[#allocation15_spill]] %s1074_s15  ;;  %s1183_s23 = sadd.s32 4294967295, %s1102_s22   ;;  %s1102_s22 = sphi %s1156_s22, %s21_s22   ;;  %s1098_s21 = sphi %s1154_s21, %s1506_s21   ;;  %s1094_s20 = sphi %s1152_s20, %s1505_s20   ;;  %s1090_s19 = sphi %s1150_s19, %s1504_s19   ;;  %s1086_s18 = sphi %s1148_s18, %s1503_s18   ;;  %s1082_s17 = sphi %s1146_s17, %s1502_s17   ;;  %s1078_s16 = sphi %s1144_s16, %s1501_s16   ;;  %s1074_s15 = sphi %s1142_s15, %s1500_s15  }
   0xb   : > { %s718_s24 = sadd.s32 4294967294, %s1102_s22   ;;  %p75_p0 = scmp.ne.s32.totalorder %s1082_s17, %s1078_s16 }
   0xc   : > { %p76_p1 = scmp.eq.s32.totalorder %s1102_s22, 0  ;;  %p81_p2 = scmp.ne.s32.totalorder %s1078_s16, %s1074_s15 }
   0xd   : > { %p1466_p3 = scmp.eq.s32.totalorder %s1183_s23, 0  ;;  %p147_p4 = scmp.eq.s32.totalorder %s1183_s23, 3 }
   0xe   : > { %p1193_p5 = por %p76_p1, %p75_p0  ;;  %p153_p6 = scmp.eq.s32.totalorder %s718_s24, 3 }
   0xf   : > { %p1199_p7 = por %p1466_p3, %p81_p2  ;;  %p1203_p8 = por %p147_p4, %p75_p0 }
  0x10   : > { %p1207_p9 = por %p153_p6, %p81_p2  ;;  %p719_p10 = scmp.ge.s32.totalorder %s1102_s22, 1 }
  0x11   : > { %s1478_s26 = scalar_select %p1199_p7, 1, 0 }
  0x12   : > { %s1479_s27 = scalar_select %p1203_p8, 1, 0 }
  0x13   : > { %s1480_s28 = scalar_select %p1207_p9, 1, 0 }
  0x14   : > { %p160_p11 = scmp.lt.s32.totalorder %s1102_s22, 5  ;;  %s1104_s30 = smov [#allocation9]  }
  0x15   : > { %1481 = sst [smem:[#allocation16_spill]] %s1480_s28  ;;  %s185_s5 = sshll.u32 %s1104_s30, 4  ;;  %s186_s5 = int_to_ptr.vmem [resolvable:$true] %s185_s5 }
  0x16   : > { %p1213_p12 = pnand %p719_p10, %p160_p11  ;;  %p824_p0 = scmp.lt.s32.totalorder %s1102_s22, 4 }
  0x17   : > { %s910_s10 = scalar_lea.hbm %s1463_s2, 1280 }
  0x18   : > { %s1482_s29 = scalar_select %p1213_p12, 1, 0 }
  0x19   : > { %p807_p13 = pneg %p1213_p12  ;;  %p1228_p2 = pnand %p824_p0, %p1193_p5 }
  0x1a   : > { %p911_p4 = scmp.ne.s32.totalorder %s1463_s2, %s910_s10  ;;  %p917_p5 = scmp.lt.u32.totalorder %s910_s10, %s1463_s2 }
  0x1b   : > { %p1222_p1 = pnand %p807_p13, %p1466_p3 }
  0x1c   : > { %s1484_s7 = scalar_select %p1228_p2, 1, 0 }
  0x1d   : > { %p912_p6 = pneg %p1222_p1 }
  0x1f   : > { %p913_p10 = pnand %p912_p6, %p911_p4 }
  0x21   : > { %p914_p11 = pneg %p913_p10 }
  0x23   : > { %p919_p13 = pnand %p917_p5, %p914_p11 }
  0x25   : > { %922 = shalt.err (!%p919_p13)
}
  0x26   : > { %s923_s24 = scalar_lea.vmem %s186_s5, 1280  ;;  %p931_p8 = scmp.lt.s32.totalorder %s186_s5, %s186_s5 }
  0x27   : > { %p924_p0 = scmp.ne.s32.totalorder %s186_s5, %s923_s24  ;;  %p932_p7 = scmp.lt.s32.totalorder %s923_s24, %s923_s24 }
  0x29   : > { %p926_p3 = pnand %p924_p0, %p912_p6  ;;  %p933_p12 = por %p932_p7, %p931_p8 }
  0x2b   : > { %p927_p9 = pneg %p926_p3 }
  0x2d   : > { %p934_p2 = pnand %p933_p12, %p927_p9 }
  0x2f   : > { %937 = shalt.err (!%p934_p2)
}
  0x30   : > { %s1474_s25 = smov 64   ;;  %s1106_s30 = smov 4  }
  0x31   : > { %813 = dma.hbm_to_vmem [thread:$0]  (!%p1222_p1), %s1463_s2, 1280, %s186_s5, [#allocation8], %s1474_s25, %s1474_s25, %s1106_s30  }
  0x32   : > { %s1107_s10 = smov [#allocation4]   ;;  %s938_s14 = scalar_lea.hbm %s1461_s0, 128 }
  0x33   : > { %s172_s11 = sshll.u32 %s1107_s10, 4  ;;  %p939_p3 = scmp.ne.s32.totalorder %s1461_s0, %s938_s14  ;;  %s173_s11 = int_to_ptr.vmem [resolvable:$true] %s172_s11 }
  0x34   : > { %p945_p9 = scmp.lt.u32.totalorder %s938_s14, %s1461_s0 }
  0x35   : > { %p941_p7 = pnand %p939_p3, %p912_p6 }
  0x37   : > { %p942_p8 = pneg %p941_p7 }
  0x39   : > { %p947_p12 = pnand %p945_p9, %p942_p8 }
  0x3b   : > { %950 = shalt.err (!%p947_p12)
}
  0x3c   : > { %s951_s5 = scalar_lea.vmem %s173_s11, 128  ;;  %p959_p11 = scmp.lt.s32.totalorder %s173_s11, %s173_s11 }
  0x3d   : > { %p952_p2 = scmp.ne.s32.totalorder %s173_s11, %s951_s5  ;;  %p960_p5 = scmp.lt.s32.totalorder %s951_s5, %s951_s5 }
  0x3f   : > { %p954_p4 = pnand %p952_p2, %p912_p6  ;;  %p961_p13 = por %p960_p5, %p959_p11 }
  0x41   : > { %p955_p10 = pneg %p954_p4 }
  0x43   : > { %p962_p0 = pnand %p961_p13, %p955_p10 }
  0x45   : > { %965 = shalt.err (!%p962_p0)
}
  0x46   : > { %810 = dma.hbm_to_vmem [thread:$0]  (!%p1222_p1), %s1461_s0, 128, %s173_s11, [#allocation5], %s1474_s25, %s1474_s25, %s1106_s30  }
  0x47   : > { %s36_s28 = sadd.s32 1, %s1094_s20  ;;  %s40_s8 = sadd.s32 1, %s1098_s21 }
  0x48   : > { %p38_p6 = scmp.ge.s32.totalorder %s36_s28, 2  ;;  %s202_s9 = sand.u32 1, %s1102_s22  }
  0x49   : > { %s204_s6 = sand.u32 1, %s1082_s17   ;;  %s760_s12 = sshll.u32 %s1098_s21, 7 }
  0x4a   : > { %s1508_s28 = smov (%p38_p6, %s36_s28), 0  ;;  %s1510_s8 = smov (!%p38_p6, %s40_s8), %s1098_s21 }
  0x4b   : > { %s723_s10 = sshll.u32 %s204_s6, 3  ;;  %p42_p3 = scmp.ge.s32.totalorder %s1510_s8, 2 }
  0x4c   : > { %s206_s13 = scalar_lea.vmem [#allocation7], %s723_s10  ;;  %s1293_s5 = scalar_lea.hbm %s1462_s1, %s760_s12 }
  0x4d   : > { %s213_s14 = sshll.u32 %s206_s13, 4  ;;  %s1512_s8 = smov (%p42_p3, %s1510_s8), 0  ;;  %s1295_s14 = int_to_ptr.vmem [resolvable:$true] %s213_s14 }
  0x4e   : > { %s65_s15 = ssub.s32 %s1098_s21, %s1512_s8  ;;  %s1304_s10 = scalar_lea.sflag [#allocation8], %s202_s9 }
  0x4f   : > { %p1300_p1 = scmp.eq.s32.totalorder %s65_s15, 0  ;;  %s966_s13 = scalar_lea.hbm %s1293_s5, 128 }
  0x50   : > { %p967_p7 = scmp.ne.s32.totalorder %s1293_s5, %s966_s13  ;;  %p1486_p8 = scmp.ne.s32.totalorder %s1484_s7, 0 }
  0x51   : > { %s971_s24 = scalar_lea.hbm %s1462_s1, 256  ;;  %p972_p4 = scmp.lt.u32.totalorder %s1293_s5, %s1462_s1 }
  0x52   : > { %p968_p9 = pneg %p1486_p8  ;;  %p973_p10 = scmp.lt.u32.totalorder %s971_s24, %s966_s13 }
  0x53   : > { %p975_p5 = scmp.lt.u32.totalorder %s966_s13, %s1293_s5 }
  0x54   : > { %p969_p12 = pnand %p968_p9, %p967_p7  ;;  %p974_p11 = por %p973_p10, %p972_p4 }
  0x56   : > { %p970_p2 = pneg %p969_p12  ;;  %p976_p13 = por %p975_p5, %p974_p11 }
  0x58   : > { %p977_p0 = pnand %p976_p13, %p970_p2 }
  0x5a   : > { %980 = shalt.err (!%p977_p0)
}
  0x5b   : > { %s981_s9 = scalar_lea.vmem %s1295_s14, 128  ;;  %s1108_s15 = smov [#allocation7]  }
  0x5c   : > { %p982_p6 = scmp.ne.s32.totalorder %s1295_s14, %s981_s9  ;;  %s986_s12 = sshll.u32 %s1108_s15, 4  ;;  %s987_s12 = int_to_ptr.vmem [resolvable:$false] %s986_s12 }
  0x5d   : > { %s988_s25 = scalar_lea.vmem %s987_s12, 256  ;;  %p989_p12 = scmp.lt.s32.totalorder %s1295_s14, %s987_s12 }
  0x5e   : > { %p984_p3 = pnand %p982_p6, %p968_p9  ;;  %p990_p4 = scmp.lt.s32.totalorder %s988_s25, %s981_s9 }
  0x60   : > { %p985_p7 = pneg %p984_p3  ;;  %p991_p10 = por %p990_p4, %p989_p12 }
  0x62   : > { %p992_p11 = pnand %p991_p10, %p985_p7 }
  0x64   : > { %995 = shalt.err (!%p992_p11)
}
  0x65   : > { %s1487_s4 = smov 64   ;;  %s1488_s13 = sadd.s32 1, %s1082_s17 }
  0x66   : > { %817 = dma.hbm_to_vmem [thread:$0]  (!%p1486_p8), %s1293_s5, 128, %s1295_s14, %s1304_s10, %s1487_s4, %s1487_s4, %s1106_s30  }
  0x67   : > { %s1340_s11 = scalar_select %p1300_p1, %s1082_s17, %s1488_s13  }
  0x68   : > { %p1489_p9 = scmp.ne.s32.totalorder %s1482_s29, 0 }
  0x69   : > { %p1490_p2 = scmp.eq.s32.totalorder (!%p1489_p9), %s1183_s23, 0 }
  0x6a   : > { %225 = sbr.rel (%p1489_p9) target bundleno = 881 (0x371), region = 36 }
  0x71   : > { %1057 = dma.done.wait (%p1490_p2), [#allocation5], 128   ;;  %p1491_p5 = pmov %p1490_p2 }
  0x72   : > { %s231_s7 = sand.u32 1, %s1183_s23   ;;  %s1350_s24 = sand.u32 1, %s1078_s16  }
  0x73   : > { %1059 = vsyncadd (%p1491_p5), [#allocation5], 4294967168  ;;  %s728_s30 = sshll.u32 %s1350_s24, 3  ;;  %s232_s14 = scalar_lea.sflag [#allocation8], %s231_s7 }
  0x74   : > { %s1353_s5 = scalar_lea.vmem [#allocation7], %s728_s30  ;;  %p1492_p1 = scmp.ne.s32.totalorder %s1478_s26, 0 }
  0x76   : > { %1061 = dma.done.wait (%p1492_p1), %s232_s14, 128  }
  0x77   : > { %1063 = vsyncadd (%p1492_p1), %s232_s14, 4294967168  ;;  %p1493_p8 = pmov %p1490_p2 }
  0x78   : > { %p1494_p13 = pmov %p1490_p2 }
  0x79   : > { %1065 = dma.done.wait (%p1493_p8), [#allocation8], 1280  }
  0x7a   : > { %1067 = vsyncadd (%p1494_p13), [#allocation8], 4294966016  ;;  %s730_s29 = sshll.u32 %s1350_s24, 4  ;;  %p266_p0 = scmp.eq.s32.totalorder %s1086_s18, 0 }
  0x7b   : > { %s1365_s6 = scalar_lea.vmem [#allocation10], %s730_s29  ;;  %v903_v0 = vld [vmem:[#allocation4] sm:$0xff] (%p266_p0)   ;;  %vm281_vm0 = vcmask (%p266_p0), 261120  }
  0x7c   : > { %271 = sbr.rel (!%p266_p0) target bundleno = 131 (0x83), region = 52  ;;  %282 = vst.msk [vmem:[#allocation2 + $0x8] sm:$0xff] (%p266_p0), %vm281_vm0, %v903_v0 }
  0x83 PF: > { %p283_p6 = scmp.eq.s32.totalorder %s1090_s19, 0 }
  0x85   : > { %p284_p3 = pnand %p283_p6, %p266_p0 }
  0x86   : > { %v904_v1 = vld [vmem:[#allocation9] sm:$0xff] (!%p284_p3)   ;;  %v1109_v2 = vmov (!%p284_p3), 0.0   ;;  %v905_v3 = vld [vmem:[#allocation9 + $0x8] sm:$0xff] (!%p284_p3)   ;;  %vm1110_vm1 = vmmov (!%p284_p3), 0   ;;  %vm316_vm2 = vcmask (!%p284_p3), 261120  }
  0x87   : > { %287 = sbr.rel (%p284_p3) target bundleno = 360 (0x168), region = 56  ;;  %773 = vmatprep.subr.bf16.mxu0 (!%p284_p3), %v1109_v2  ;;  %777 = vmatprep.mubr.msk.bf16.mxu0 (!%p284_p3), %vm1110_vm1, %v1109_v2  ;;  %v906_v4 = vld [vmem:[#allocation4] sm:$0xff] (!%p284_p3)  }
  0x88   : > { %774 = vmatpush3.bf16.msra.mxu0 (!%p284_p3), %v904_v1  ;;  %v737_v5 = vld [vmem:[%s1464_s3] ss:$0 sm:$0xff] (!%p284_p3) }
  0x89   : > { %775 = vmatprep.subr.bf16.mxu0 (!%p284_p3), %v1109_v2 }
  0x8c   : > { %776 = vmatpush3.bf16.msra.mxu0 (!%p284_p3), %v905_v3 }
  0x8f   : > { %778 = vmatmul.mubr.msk.bf16.vlgmr.msra.gmra.mrb[0].mxu0 %vm316_vm2, %v906_v4 }
 0x162   : > { %v354_v6 = vpop.f32.mrb[0].mxu0 }
 0x163   : > { %v367_v7 = vadd.f32 %v737_v5, %v354_v6  ;;  %v779_v8 = vpop.f32.mrb[1].mxu0 }
 0x164   : > { %v357_v9 = vpop.f32.mrb[2].mxu0 }
 0x165   : > { %370 = vst [vmem:[#allocation3] sm:$0xff] %v367_v7  ;;  %v368_v10 = vadd.f32 %v737_v5, %v357_v9  ;;  %v780_v11 = vpop.f32.mrb[3].mxu0 }
 0x167   : > { %371 = vst [vmem:[#allocation3 + $0x8] sm:$0xff] %v368_v10 }
 0x168 PF: > { %p372_p7 = scmp.ne.s32.totalorder %s1090_s19, 0 }
 0x16a   : > { %p373_p12 = pnand %p372_p7, %p266_p0 }
 0x16b   : > { %v1111_v12 = vmov (!%p373_p12), 0.0  }
 0x16c   : > { %376 = sbr.rel (%p373_p12) target bundleno = 371 (0x173), region = 60  ;;  %378 = vst [vmem:[#allocation3] sm:$0xff] (!%p373_p12), %v1111_v12  ;;  %379 = vst [vmem:[#allocation3 + $0x8] sm:$0xff] (!%p373_p12), %v1111_v12 }
 0x173 PF: > { %s1379_s10 = sadd.s32 1, %s1086_s18  ;;  %v1112_v13 = vmov 0.0   ;;  %vm1113_vm3 = vmmov 0   ;;  %s455_s25 = ssub.s32 0, %s1086_s18  ;;  %v907_v15 = vld [vmem:[%s1353_s5] sm:$0xff]   ;;  %vm407_vm4 = vcmask 130048  }
 0x174   : > { %781 = vmatprep.subr.bf16.mxu0 %v1112_v13  ;;  %p387_p4 = scmp.lt.s32.totalorder %s1379_s10, 0  ;;  %s388_s9 = ssub.s32 0, %s1379_s10  ;;  %783 = vmatprep.mubr.msk.bf16.mxu0 %vm1113_vm3, %v1112_v13 }
 0x175   : > { %s738_s15 = smin.u32 %s388_s9, %s1379_s10  ;;  %s744_s13 = smin.u32 %s1086_s18, %s455_s25 }
 0x176   : > { %s390_s12 = sand.u32 1, %s738_s15   ;;  %p454_p10 = scmp.lt.s32.totalorder %s1086_s18, 0 }
 0x177   : > { %s391_s4 = ssub.s32 0, %s390_s12  ;;  %s457_s7 = sand.u32 1, %s744_s13  }
 0x178   : > { %s1514_s4 = smov (!%p387_p4, %s391_s4), %s390_s12  ;;  %s458_s14 = ssub.s32 0, %s457_s7 }
 0x179   : > { %p740_p11 = scmp.lt.s32.totalorder %s1514_s4, 0  ;;  %s397_s30 = sadd.s32 2, %s1514_s4 }
 0x17a   : > { %s1518_s14 = smov (!%p454_p10, %s458_s14), %s457_s7  ;;  %p453_p2 = scmp.lt.s32.totalorder %s1379_s10, 2 }
 0x17b   : > { %s1516_s30 = smov (!%p740_p11, %s397_s30), %s1514_s4  ;;  %p746_p9 = scmp.lt.s32.totalorder %s1518_s14, 0 }
 0x17c   : > { %s741_s29 = sshll.u32 %s1516_s30, 3  ;;  %s464_s26 = sadd.s32 2, %s1518_s14 }
 0x17d   : > { %s400_s23 = scalar_lea.vmem [#allocation2], %s741_s29  ;;  %s1520_s26 = smov (!%p746_p9, %s464_s26), %s1518_s14 }
 0x17e   : > { %v401_v14 = vld [vmem:[%s400_s23] sm:$0xff]  ;;  %p466_p5 = scmp.eq.s32.totalorder %s1520_s26, 0 }
 0x17f   : > { %782 = vmatpush3.bf16.msra.mxu0 %v401_v14 }
 0x180   : > { %p467_p1 = pnand %p466_p5, %p453_p2 }
 0x181   : > { %vm475_vm5 = vcmask (!%p467_p1), 261120  }
 0x182   : > { %784 = vmatmul.mubr.msk.bf16.vlgmr.msra.gmra.mrb[0].mxu0 %vm407_vm4, %v907_v15 }
 0x252   : > { %470 = sbr.rel (%p467_p1) target bundleno = 603 (0x25b), region = 64 }
 0x255   : > { %v445_v16 = vpop.f32.mrb[0].mxu0 }
 0x256   : > { %v785_v17 = vpop.f32.mrb[1].mxu0 }
 0x257   : > { %v448_v18 = vpop.f32.mrb[2].mxu0 }
 0x258   : > { %v452_v19 = vpack.c.bf16 %v448_v18, %v445_v16  ;;  %v786_v20 = vpop.f32.mrb[3].mxu0 }
 0x25a   : > { %476 = vst.msk [vmem:[#allocation2] sm:$0xff] %vm475_vm5, %v452_v19 }
 0x25b PF: > { %p477_p8 = scmp.eq.s32.totalorder %s1520_s26, 1 }
 0x25d   : > { %p478_p13 = pnand %p477_p8, %p453_p2 }
 0x25e   : > { %vm487_vm6 = vcmask (!%p478_p13), 261120  }
 0x25f   : > { %481 = sbr.rel (%p478_p13) target bundleno = 614 (0x266), region = 68  ;;  %747 = vst.msk [vmem:[#allocation2 + $0x8] sm:$0xff] (!%p478_p13), %vm487_vm6, %v452_v19 }
 0x266 PF: > { %787 = vmatprep.subr.bf16.mxu1 %v1112_v13  ;;  %s748_s5 = sshll.u32 %s1090_s19, 1  ;;  %791 = vmatprep.mubr.msk.bf16.mxu1 %vm1113_vm3, %v1112_v13  ;;  %vm516_vm7 = vcmask 261120   ;;  %v502_v23 = vld [vmem:[#allocation3] sm:$0xff]  ;;  %v503_v25 = vld [vmem:[#allocation3 + $0x8] sm:$0xff]  ;;  %p754_p0 = scmp.ne.s32.totalorder %s1086_s18, 1 }
 0x267   : > { %s490_s9 = sadd.s32 %s1086_s18, %s748_s5 }
 0x268   : > { %s762_s15 = sshll.u32 %s490_s9, 5 }
 0x269   : > { %s763_s12 = sadd.s32 32, %s762_s15 }
 0x26a   : > { %s493_s25 = sshra.s32 %s763_s12, 3 }
 0x26b   : > { %s750_s4 = sshll.u32 %s493_s25, 2 }
 0x26c   : > { %s496_s13 = scalar_lea.vmem [#allocation9], %s750_s4 }
 0x26d   : > { %v908_v21 = vld [vmem:[%s496_s13] sm:$0xff]   ;;  %v909_v22 = vld [vmem:[%s496_s13 + $0x8] sm:$0xff]  }
 0x26e   : > { %788 = vmatpush3.bf16.msra.mxu1 %v908_v21 }
 0x26f   : > { %789 = vmatprep.subr.bf16.mxu1 %v1112_v13 }
 0x272   : > { %790 = vmatpush3.bf16.msra.mxu1 %v909_v22 }
 0x275   : > { %792 = vmatmul.mubr.msk.bf16.vlgmr.msra.gmra.mrb[0].mxu1 %vm516_vm7, %v452_v19 }
 0x347   : > { %568 = sbr.rel (%p754_p0) target bundleno = 854 (0x356), region = 72 }
 0x348   : > { %v554_v24 = vpop.f32.mrb[0].mxu1 }
 0x349   : > { %v561_v26 = vadd.f32 %v554_v24, %v502_v23  ;;  %v793_v27 = vpop.f32.mrb[1].mxu1 }
 0x34a   : > { %v557_v28 = vpop.f32.mrb[2].mxu1 }
 0x34b   : > { %563 = vst [vmem:[#allocation3] sm:$0xff] %v561_v26  ;;  %v562_v29 = vadd.f32 %v557_v28, %v503_v25  ;;  %v794_v30 = vpop.f32.mrb[3].mxu1 }
 0x34d   : > { %564 = vst [vmem:[#allocation3 + $0x8] sm:$0xff] %v562_v29 }
 0x352   : > { %v569_v31 = vld [vmem:[#allocation3] sm:$0xff] }
 0x353   : > { %572 = vst [vmem:[%s1365_s6] sm:$0xff] %v569_v31 }
 0x354   : > { %v570_v32 = vld [vmem:[#allocation3 + $0x8] sm:$0xff] }
 0x355   : > { %573 = vst [vmem:[%s1365_s6 + $0x8] sm:$0xff] %v570_v32 }
 0x356 PF: > { %s764_s10 = sshll.u32 %s1090_s19, 8  ;;  %s1495_s14 = sld [smem:[#allocation17_spill]] }
 0x357   : > { %s588_s23 = sshll.u32 %s1365_s6, 4  ;;  %s575_s18 = scalar_lea.sflag [#allocation6], %s1350_s24  ;;  %s1407_s23 = int_to_ptr.vmem [resolvable:$true] %s588_s23 }
 0x358   : > { %s996_s26 = scalar_lea.vmem %s1407_s23, 256  ;;  %p1496_p3 = scmp.ne.s32.totalorder %s1479_s27, 0 }
 0x359   : > { %p997_p6 = scmp.ne.s32.totalorder %s1407_s23, %s996_s26  ;;  %s1114_s5 = smov [#allocation10]  }
 0x35a   : > { %s1000_s9 = sshll.u32 %s1114_s5, 4  ;;  %s1001_s9 = int_to_ptr.vmem [resolvable:$false] %s1000_s9 }
 0x35b   : > { %p998_p7 = pnand %p997_p6, %p1496_p3  ;;  %s1002_s19 = scalar_lea.vmem %s1001_s9, 512 }
 0x35c   : > { %s1404_s29 = scalar_lea.hbm %s1495_s14, %s764_s10  ;;  %p1003_p4 = scmp.lt.s32.totalorder %s1407_s23, %s1001_s9 }
 0x35d   : > { %p999_p12 = pneg %p998_p7  ;;  %p1004_p10 = scmp.lt.s32.totalorder %s1002_s19, %s996_s26 }
 0x35f   : > { %p1005_p11 = por %p1004_p10, %p1003_p4 }
 0x361   : > { %p1006_p9 = pnand %p1005_p11, %p999_p12 }
 0x363   : > { %1009 = shalt.err (!%p1006_p9)
}
 0x364   : > { %s1010_s6 = scalar_lea.hbm %s1404_s29, 256  ;;  %s1014_s25 = scalar_lea.hbm %s1495_s14, 512 }
 0x365   : > { %p1011_p2 = scmp.ne.s32.totalorder %s1404_s29, %s1010_s6  ;;  %p1015_p8 = scmp.lt.u32.totalorder %s1404_s29, %s1495_s14 }
 0x366   : > { %p1016_p13 = scmp.lt.u32.totalorder %s1014_s25, %s1010_s6  ;;  %p1018_p6 = scmp.lt.u32.totalorder %s1010_s6, %s1404_s29 }
 0x367   : > { %p1012_p5 = pnand %p1011_p2, %p1496_p3 }
 0x368   : > { %p1017_p0 = por %p1016_p13, %p1015_p8 }
 0x369   : > { %p1013_p1 = pneg %p1012_p5 }
 0x36a   : > { %p1019_p7 = por %p1018_p6, %p1017_p0 }
 0x36c   : > { %p1020_p12 = pnand %p1019_p7, %p1013_p1 }
 0x36e   : > { %1023 = shalt.err (!%p1020_p12)
}
 0x36f   : > { %s1115_s10 = smov 128   ;;  %s1116_s7 = smov 8  }
 0x370   : > { %805 = dma.vmem_to_hbm [thread:$0]  (%p1496_p3), %s1407_s23, 256, %s1404_s29, %s575_s18, %s1115_s10, %s1115_s10, %s1116_s7  }
 0x371 PF: > { %s1497_s30 = sld [smem:[#allocation15_spill]]  ;;  %s1498_s26 = sld [smem:[#allocation16_spill]] }
 0x372   : > { %p827_p4 = scmp.ge.s32.totalorder %s1102_s22, 2 }
 0x377   : > { %s603_s5 = sand.u32 1, %s1497_s30   ;;  %p1499_p10 = scmp.ne.s32.totalorder %s1498_s26, 0 }
 0x378   : > { %s604_s9 = scalar_lea.sflag [#allocation6], %s603_s5 }
 0x379   : > { %p819_p11 = pnand %p827_p4, %p1499_p10 }
 0x37b   : > { %1069 = dma.done.wait (!%p819_p11), %s604_s9, 256  }
 0x37c   : > { %1071 = vsyncadd (!%p819_p11), %s604_s9, 4294967040  ;;  %s21_s22 = sadd.s32 1, %s1102_s22   ;;  %s1500_s15 = smov %s1078_s16 }
 0x37d   : > { %p18_p9 = scmp.ge.s32.totalorder %s21_s22, 6   ;;  %s1501_s16 = smov %s1082_s17 }
 0x37e   : > { %s1502_s17 = smov %s1340_s11  ;;  %s1503_s18 = smov %s1094_s20 }
 0x37f   : > { %s1504_s19 = smov %s1098_s21  ;;  %s1505_s20 = smov %s1508_s28 }
 0x380   : > { %s1506_s21 = smov %s1512_s8  ;;  %20 = sbr.rel (!%p18_p9) target bundleno = 10 (0xa), region = 125 }
 0x387   :  { %609 = vsyncpa [#allocation5], 1 }
 0x388   :  { %611 = vsyncpa [#allocation5 + $0x1], 1 }
 0x389   :  { %612 = vsyncpa [#allocation8], 1 }
 0x38a   :  { %614 = vsyncpa [#allocation8 + $0x1], 1 }
 0x38b   :  { %615 = vsyncpa [#allocation6], 1 }
 0x38c   :  { %617 = vsyncpa [#allocation6 + $0x1], 1 }

</bundles_post_ra>
